<compile_context>
chip_gen: v5e
topology: v5e:2x2
jax: 0.10.0
libtpu: 0.0.40
codegen_flags: <defaults>
</compile_context>

<pallas_src>
import jax
import jax.numpy as jnp
from jax.experimental import pallas as pl
from jax.experimental.pallas import tpu as pltpu


def _round_up(x, m):
    return ((x + m - 1) // m) * m


def _pre_nms_kernel(x_ref, best_ref, cls_ref):
    """One (tn, D) tile of one batch element; D = 5 + num_classes.

    Input keeps the original (B, N, D) memory order: boxes on sublanes,
    features on lanes.  The per-box class reduction therefore runs on the
    lane axis (XLU reductions), keeping the VPU nearly idle.
    """
    x = x_ref[...]                                            # (tn, D)
    tn, d = x.shape
    num_classes = d - 5

    lane = jax.lax.broadcasted_iota(jnp.int32, (tn, d), dimension=1)
    neg_inf = jnp.asarray(-jnp.inf, x.dtype)

    # Best *raw* class score per box (objectness multiply deferred; valid
    # because conf >= 0 for post-sigmoid objectness, so argmax is invariant).
    cls_scores = jnp.where(lane >= 5, x, neg_inf)             # (tn, D)
    best_raw = jnp.max(cls_scores, axis=1, keepdims=True)     # (tn, 1)

    # First class index attaining the max (matches argmax tie-breaking).
    cand = jnp.where(cls_scores == best_raw,
                     (lane - 5).astype(jnp.float32),
                     jnp.float32(num_classes))
    best_cls = jnp.min(cand, axis=1, keepdims=True)           # (tn, 1)

    # Objectness (feature lane 4), extracted with the same masked-reduce
    # machinery (avoids an unaligned lane slice).
    conf = jnp.max(jnp.where(lane == 4, x, neg_inf), axis=1, keepdims=True)

    best_ref[...] = (best_raw * conf).astype(best_ref.dtype)
    cls_ref[...] = best_cls.astype(jnp.int32)


def yolo_pre_nms(x, tn=4096):
    """x: (B, N, D) with D = 5 + num_classes (original PyTorch layout).

    Returns (best (B, N), cls (B, N)): per-box best conf-scaled class score
    and the corresponding class index.
    """
    B, N, D = x.shape
    tn = max(128, min(tn, _round_up(N, 128)))          # sublane tile over boxes
    if B == 1:
        # Keep >= 2 "parallel" grid steps so v7x megacore can split the work.
        tn = min(tn, _round_up((N + 1) // 2, 128))
    grid = (B, pl.cdiv(N, tn))

    out_shape = (
        jax.ShapeDtypeStruct((B, N, 1), x.dtype),       # per-box best score
        jax.ShapeDtypeStruct((B, N, 1), jnp.int32),     # per-box best class
    )
    best, cls = pl.pallas_call(
        _pre_nms_kernel,
        out_shape=out_shape,
        grid=grid,
        in_specs=[pl.BlockSpec((None, tn, D), lambda b, n: (b, n, 0))],
        out_specs=(
            pl.BlockSpec((None, tn, 1), lambda b, n: (b, n, 0)),
            pl.BlockSpec((None, tn, 1), lambda b, n: (b, n, 0)),
        ),
        compiler_params=pltpu.CompilerParams(
            dimension_semantics=("parallel", "parallel")),
    )(x)
    return best[:, :, 0], cls[:, :, 0]


class ONNX_TRT8:
    """JAX/Pallas port of the PyTorch ONNX_TRT8 module (no learnable params)."""

    def __init__(self, max_obj=100, iou_thres=0.45, score_thres=0.25):
        self.background_class = -1
        self.box_coding = 1
        self.iou_threshold = iou_thres
        self.max_obj = max_obj
        self.plugin_version = '1'
        self.score_activation = 0
        self.score_threshold = score_thres

    def __call__(self, x):
        # x: (B, num_boxes, 5 + num_classes), same axis convention as PyTorch.
        best, cls = yolo_pre_nms(x)                            # (B, N), (B, N)

        # Deterministic stand-in for the TRT EfficientNMS_TRT plugin (the
        # PyTorch reference returns random placeholders here).
        # TODO(synk): IoU-based box suppression of EfficientNMS_TRT is not implemented.
        det_scores, top_idx = jax.lax.top_k(best, self.max_obj)          # (B, max_obj)
        # Gather whole rows (contiguous, max_obj * D elems/batch) from the
        # original input, then slice the 4 box coords -- avoids ever
        # materializing an (B, N, 4) box tensor.
        det_rows = jnp.take_along_axis(x, top_idx[:, :, None], axis=1)   # (B, max_obj, D)
        det_boxes = det_rows[:, :, :4]
        det_classes = jnp.take_along_axis(cls, top_idx, axis=1)          # int32
        num_det = jnp.sum((det_scores >= self.score_threshold).astype(jnp.int32),
                          axis=1, keepdims=True)                         # (B, 1) int32
        return num_det, det_boxes, det_scores, det_classes


if __name__ == "__main__":
    B, N, C = 2, 256, 16            # batch, num_boxes, num_classes
    D = 5 + C
    key = jax.random.PRNGKey(0)
    x = jax.random.uniform(key, (B, N, D), dtype=jnp.float32)

    model = ONNX_TRT8(max_obj=100, iou_thres=0.45, score_thres=0.25)
    num_det, det_boxes, det_scores, det_classes = jax.jit(model.__call__)(x)
    jax.block_until_ready((num_det, det_boxes, det_scores, det_classes))

    assert num_det.shape == (B, 1) and num_det.dtype == jnp.int32
    assert det_boxes.shape == (B, 100, 4)
    assert det_scores.shape == (B, 100)
    assert det_classes.shape == (B, 100) and det_classes.dtype == jnp.int32

    # Cross-check against a pure-JAX reference of the hot path.
    score_ref = x[:, :, 5:] * x[:, :, 4:5]
    best_ref = jnp.max(score_ref, axis=-1)
    cls_ref = jnp.argmax(score_ref, axis=-1).astype(jnp.int32)
    rs, ri = jax.lax.top_k(best_ref, 100)
    assert jnp.allclose(rs, det_scores, rtol=1e-6, atol=1e-6)
    assert jnp.allclose(
        jnp.take_along_axis(x[:, :, :4], ri[:, :, None], axis=1), det_boxes,
        rtol=1e-6, atol=1e-6)
    assert jnp.array_equal(jnp.take_along_axis(cls_ref, ri, axis=1), det_classes)

    print("KERNEL_OK")
</pallas_src>

<mosaic_0001>
module attributes {stable_mosaic.version = 11 : i64} {
  func.func @_pre_nms_kernel(%arg0: i32, %arg1: i32, %arg2: memref<1x256x21xf32, #tpu.memory_space<vmem>>, %arg3: memref<1x256x1xf32, #tpu.memory_space<vmem>>, %arg4: memref<1x256x1xi32, #tpu.memory_space<vmem>>) attributes {dimension_semantics = [#tpu.dimension_semantics<parallel>, #tpu.dimension_semantics<parallel>], iteration_bounds = array<i64: 2, 1>, scalar_prefetch = 0 : i64, scratch_operands = 0 : i64, tpu.core_type = #tpu.core_type<tc>, window_params = [{transform_indices = @transform_0, window_bounds = array<i64: 1, 256, 21>}, {transform_indices = @transform_1, window_bounds = array<i64: 1, 256, 1>}, {transform_indices = @transform_2, window_bounds = array<i64: 1, 256, 1>}]} {
    %c0 = arith.constant 0 : index
    %c0_0 = arith.constant 0 : index
    %c0_1 = arith.constant 0 : index
    %0 = vector.load %arg2[%c0, %c0_0, %c0_1] : memref<1x256x21xf32, #tpu.memory_space<vmem>>, vector<1x256x21xf32>
    %1 = vector.shape_cast %0 : vector<1x256x21xf32> to vector<256x21xf32>
    %2 = tpu.iota {dimensions = array<i32: 1>} : vector<256x21xi32>
    %c5_i32 = arith.constant 5 : i32
    %3 = vector.broadcast %c5_i32 : i32 to vector<256x21xi32>
    %4 = arith.cmpi sge, %2, %3 : vector<256x21xi32>
    %cst = arith.constant 0xFF800000 : f32
    %5 = vector.broadcast %cst : f32 to vector<256x21xf32>
    %6 = arith.select %4, %1, %5 : vector<256x21xi1>, vector<256x21xf32>
    %cst_2 = arith.constant dense<0xFF800000> : vector<256xf32>
    %7 = vector.multi_reduction <maximumf>, %6, %cst_2 [1] : vector<256x21xf32> to vector<256xf32>
    %8 = vector.shape_cast %7 : vector<256xf32> to vector<256x1xf32>
    %9 = vector.broadcast %8 : vector<256x1xf32> to vector<256x21xf32>
    %10 = arith.cmpf oeq, %6, %9 : vector<256x21xf32>
    %c5_i32_3 = arith.constant 5 : i32
    %11 = vector.broadcast %c5_i32_3 : i32 to vector<256x21xi32>
    %12 = arith.subi %2, %11 : vector<256x21xi32>
    %13 = arith.sitofp %12 : vector<256x21xi32> to vector<256x21xf32>
    %cst_4 = arith.constant 1.600000e+01 : f32
    %14 = vector.broadcast %cst_4 : f32 to vector<256x21xf32>
    %15 = arith.select %10, %13, %14 : vector<256x21xi1>, vector<256x21xf32>
    %cst_5 = arith.constant dense<0x7F800000> : vector<256xf32>
    %16 = vector.multi_reduction <minimumf>, %15, %cst_5 [1] : vector<256x21xf32> to vector<256xf32>
    %17 = vector.shape_cast %16 : vector<256xf32> to vector<256x1xf32>
    %c4_i32 = arith.constant 4 : i32
    %18 = vector.broadcast %c4_i32 : i32 to vector<256x21xi32>
    %19 = arith.cmpi eq, %2, %18 : vector<256x21xi32>
    %cst_6 = arith.constant 0xFF800000 : f32
    %20 = vector.broadcast %cst_6 : f32 to vector<256x21xf32>
    %21 = arith.select %19, %1, %20 : vector<256x21xi1>, vector<256x21xf32>
    %cst_7 = arith.constant dense<0xFF800000> : vector<256xf32>
    %22 = vector.multi_reduction <maximumf>, %21, %cst_7 [1] : vector<256x21xf32> to vector<256xf32>
    %23 = vector.shape_cast %22 : vector<256xf32> to vector<256x1xf32>
    %24 = arith.mulf %8, %23 : vector<256x1xf32>
    %c0_8 = arith.constant 0 : index
    %c0_9 = arith.constant 0 : index
    %c0_10 = arith.constant 0 : index
    %25 = vector.load %arg3[%c0_8, %c0_9, %c0_10] : memref<1x256x1xf32, #tpu.memory_space<vmem>>, vector<1x256x1xf32>
    %26 = vector.shape_cast %25 : vector<1x256x1xf32> to vector<256x1xf32>
    %27 = vector.shape_cast %24 : vector<256x1xf32> to vector<1x256x1xf32>
    tpu.vector_store %arg3[%c0_8, %c0_9, %c0_10], %27 {strides = array<i32>} : memref<1x256x1xf32, #tpu.memory_space<vmem>>, vector<1x256x1xf32>,
    %28 = arith.fptosi %17 : vector<256x1xf32> to vector<256x1xi32>
    %c0_11 = arith.constant 0 : index
    %c0_12 = arith.constant 0 : index
    %c0_13 = arith.constant 0 : index
    %29 = vector.load %arg4[%c0_11, %c0_12, %c0_13] : memref<1x256x1xi32, #tpu.memory_space<vmem>>, vector<1x256x1xi32>
    %30 = vector.shape_cast %29 : vector<1x256x1xi32> to vector<256x1xi32>
    %31 = vector.shape_cast %28 : vector<256x1xi32> to vector<1x256x1xi32>
    tpu.vector_store %arg4[%c0_11, %c0_12, %c0_13], %31 {strides = array<i32>} : memref<1x256x1xi32, #tpu.memory_space<vmem>>, vector<1x256x1xi32>,
    return
  }
  func.func @transform_0(%arg0: i32, %arg1: i32) -> (i32, i32, i32) {
    %c0_i32 = arith.constant 0 : i32
    %c0_i32_0 = arith.constant 0 : i32
    return %arg0, %arg1, %c0_i32 : i32, i32, i32
  }
  func.func @transform_1(%arg0: i32, %arg1: i32) -> (i32, i32, i32) {
    %c0_i32 = arith.constant 0 : i32
    %c0_i32_0 = arith.constant 0 : i32
    return %arg0, %arg1, %c0_i32 : i32, i32, i32
  }
  func.func @transform_2(%arg0: i32, %arg1: i32) -> (i32, i32, i32) {
    %c0_i32 = arith.constant 0 : i32
    %c0_i32_0 = arith.constant 0 : i32
    return %arg0, %arg1, %c0_i32 : i32, i32, i32
  }
}

</mosaic_0001>

<bundles_post_ra>
// kernel: a_call__.1
= control target key start
LH: loop header
LB: loop body
LE: loop exit
PB: predicated region body
PF: predicated region fallthrough
CT: control target
= control target key end

     0   :  { %s1168_s9 = smov 0   ;;  %s1170_s10 = smov 0   ;;  %s2022_s0 = inlined_call_operand.vmem [shape: f32[2,256,21], index: 0, kind: input, shape index: {}]   ;;  %s2023_s1 = inlined_call_operand.vmem [shape: f32[2,256,1], index: 1, kind: output, shape index: {0}]   ;;  %s2024_s2 = inlined_call_operand.vmem [shape: s32[2,256,1], index: 2, kind: output, shape index: {1}]  }
   0x1   :  { %s1172_s11 = smov 0  }
   0x2 LB: > { %s25_s12 = sadd.s32 1, %s1147_s10  ;;  %p932_p0 = scmp.ge.s32.totalorder %s1151_s11, 1  ;;  %s1151_s11 = sphi %s1172_s11, %s13_s11   ;;  %s1147_s10 = sphi %s1170_s10, %s2062_s10   ;;  %s1143_s9 = sphi %s1168_s9, %s2061_s9  }
   0x3   : > { %p27_p1 = scmp.ge.s32.totalorder %s25_s12, 2  ;;  %p138_p2 = scmp.lt.s32.totalorder %s1151_s11, 3 }
   0x5   : > { %s2064_s12 = smov (%p27_p1, %s25_s12), 0  ;;  %p139_p3 = pnand %p932_p0, %p138_p2 }
   0x7   : > { %142 = sbr.rel (%p139_p3) target bundleno = 428 (0x1ac), region = 24 }
   0xc   : > { %p178_p4 = scmp.lt.s32.totalorder %s1143_s9, 1  ;;  %v239_v0 = vlaneseq  ;;  %vm274_vm1 = vcmask 171008  }
   0xe   : > { %s2066_s9 = smov (!%p178_p4, %s1143_s9), 1  ;;  %v1186_v1 = vand.u32 127, %v239_v0 }
   0xf   : > { %s1188_s13 = sshll.u32 %s2066_s9, 8 }
  0x10   : > { %vm241_vm0 = vcmp.ge.s32.totalorder %v1186_v1, 5  ;;  %s1195_s16 = scalar_lea.vmem %s2022_s0, %s1188_s13  ;;  %s1775_s19 = scalar_lea.vmem %s2024_s2, %s1188_s13 }
  0x11   : > { %v1198_v2 = vld [vmem:[%s1195_s16 + $0x20] sm:$0xff]  ;;  %v1201_v3 = vld [vmem:[%s1195_s16 + $0x10] sm:$0xff]  ;;  %v1228_v11 = vld [vmem:[%s1195_s16 + $0x28] sm:$0xff]  ;;  %s1909_s22 = scalar_lea.vmem %s2023_s1, %s1188_s13 }
  0x12   : > { %v1204_v4 = vld [vmem:[%s1195_s16] sm:$0xff]  ;;  %v1209_v5 = vsel %vm241_vm0, %v1198_v2, -inf  ;;  %v1214_v6 = vsel %vm241_vm0, %v1201_v3, -inf  ;;  %v1231_v12 = vld [vmem:[%s1195_s16 + $0x18] sm:$0xff]  ;;  %v1234_v13 = vld [vmem:[%s1195_s16 + $0x8] sm:$0xff]  ;;  %v1239_v14 = vsel %vm241_vm0, %v1228_v11, -inf }
  0x13   : > { %v1219_v7 = vsel %vm241_vm0, %v1204_v4, -inf  ;;  %v287_v8 = vsel %vm274_vm1, %v1209_v5, -inf  ;;  %v281_v9 = vsel %vm274_vm1, %v1214_v6, -inf  ;;  %v1244_v15 = vsel %vm241_vm0, %v1231_v12, -inf  ;;  %v1258_v20 = vld [vmem:[%s1195_s16 + $0x40] sm:$0xff]  ;;  %v1261_v21 = vld [vmem:[%s1195_s16 + $0x38] sm:$0xff] }
  0x14   : > { %v275_v10 = vsel %vm274_vm1, %v1219_v7, -inf  ;;  %288 = vmax.xlane.f32.xlu2 %v287_v8  ;;  %282 = vmax.xlane.f32.xlu1 %v281_v9  ;;  %v1249_v16 = vsel %vm241_vm0, %v1234_v13, -inf  ;;  %v290_v17 = vsel %vm274_vm1, %v1239_v14, -inf  ;;  %v284_v18 = vsel %vm274_vm1, %v1244_v15, -inf  ;;  %v1264_v22 = vld [vmem:[%s1195_s16 + $0x30] sm:$0xff]  ;;  %v1288_v29 = vld [vmem:[%s1195_s16 + $0x58] sm:$0xff] }
  0x15   : > { %276 = vmax.xlane.f32.xlu0 %v275_v10  ;;  %v278_v19 = vsel %vm274_vm1, %v1249_v16, -inf  ;;  %v1269_v23 = vsel %vm241_vm0, %v1258_v20, -inf  ;;  %v1274_v24 = vsel %vm241_vm0, %v1261_v21, -inf  ;;  %v1279_v25 = vsel %vm241_vm0, %v1264_v22, -inf  ;;  %v1291_v30 = vld [vmem:[%s1195_s16 + $0x50] sm:$0xff]  ;;  %v1294_v31 = vld [vmem:[%s1195_s16 + $0x48] sm:$0xff] }
  0x16   : > { %v299_v26 = vsel %vm274_vm1, %v1269_v23, -inf  ;;  %v296_v27 = vsel %vm274_vm1, %v1274_v24, -inf  ;;  %v293_v28 = vsel %vm274_vm1, %v1279_v25, -inf  ;;  %v1299_v32 = vsel %vm241_vm0, %v1288_v29, -inf  ;;  %v1318_v38 = vld [vmem:[%s1195_s16 + $0x70] sm:$0xff]  ;;  %v1321_v39 = vld [vmem:[%s1195_s16 + $0x68] sm:$0xff] }
  0x17   : > { %v1304_v33 = vsel %vm241_vm0, %v1291_v30, -inf  ;;  %v1309_v34 = vsel %vm241_vm0, %v1294_v31, -inf  ;;  %v308_v35 = vsel %vm274_vm1, %v1299_v32, -inf  ;;  %v1324_v40 = vld [vmem:[%s1195_s16 + $0x60] sm:$0xff]  ;;  %v1329_v41 = vsel %vm241_vm0, %v1318_v38, -inf  ;;  %v1348_v47 = vld [vmem:[%s1195_s16 + $0x88] sm:$0xff] }
  0x18   : > { %v305_v36 = vsel %vm274_vm1, %v1304_v33, -inf  ;;  %v302_v37 = vsel %vm274_vm1, %v1309_v34, -inf  ;;  %v1334_v42 = vsel %vm241_vm0, %v1321_v39, -inf  ;;  %v1339_v43 = vsel %vm241_vm0, %v1324_v40, -inf  ;;  %v1351_v48 = vld [vmem:[%s1195_s16 + $0x80] sm:$0xff]  ;;  %v1354_v49 = vld [vmem:[%s1195_s16 + $0x78] sm:$0xff] }
  0x19   : > { %v317_v44 = vsel %vm274_vm1, %v1329_v41, -inf  ;;  %v314_v45 = vsel %vm274_vm1, %v1334_v42, -inf  ;;  %v311_v46 = vsel %vm274_vm1, %v1339_v43, -inf  ;;  %v1359_v50 = vsel %vm241_vm0, %v1348_v47, -inf  ;;  %v1378_v56 = vld [vmem:[%s1195_s16 + $0xa0] sm:$0xff]  ;;  %v1381_v57 = vld [vmem:[%s1195_s16 + $0x98] sm:$0xff] }
  0x1a   : > { %v1364_v51 = vsel %vm241_vm0, %v1351_v48, -inf  ;;  %v1369_v52 = vsel %vm241_vm0, %v1354_v49, -inf  ;;  %v326_v53 = vsel %vm274_vm1, %v1359_v50, -inf  ;;  %2037 = vst [vmem:[#allocation2_spill] sm:$0xff] %v1378_v56  ;;  %v1384_v58 = vld [vmem:[%s1195_s16 + $0x90] sm:$0xff]  ;;  %v1389_v59 = vsel %vm241_vm0, %v1378_v56, -inf }
  0x1b   : > { %v323_v54 = vsel %vm274_vm1, %v1364_v51, -inf  ;;  %v320_v55 = vsel %vm274_vm1, %v1369_v52, -inf  ;;  %v1394_v60 = vsel %vm241_vm0, %v1381_v57, -inf  ;;  %v1399_v61 = vsel %vm241_vm0, %v1384_v58, -inf  ;;  %v1408_v8 = vld [vmem:[%s1195_s16 + $0xb8] sm:$0xff]  ;;  %v1411_v9 = vld [vmem:[%s1195_s16 + $0xb0] sm:$0xff] }
  0x1c   : > { %291 = vmax.xlane.f32.xlu2 %v290_v17  ;;  %285 = vmax.xlane.f32.xlu1 %v284_v18  ;;  %v335_v62 = vsel %vm274_vm1, %v1389_v59, -inf  ;;  %v332_v63 = vsel %vm274_vm1, %v1394_v60, -inf  ;;  %v329_v0 = vsel %vm274_vm1, %v1399_v61, -inf  ;;  %2038 = vst [vmem:[#allocation3_spill] sm:$0xff] %v1408_v8  ;;  %v1414_v10 = vld [vmem:[%s1195_s16 + $0xa8] sm:$0xff]  ;;  %v1419_v17 = vsel %vm241_vm0, %v1408_v8, -inf }
  0x1d   : > { %279 = vmax.xlane.f32.xlu0 %v278_v19  ;;  %2039 = vst [vmem:[#allocation4_spill] sm:$0xff] %v1411_v9  ;;  %v1424_v18 = vsel %vm241_vm0, %v1411_v9, -inf  ;;  %v1429_v19 = vsel %vm241_vm0, %v1414_v10, -inf }
  0x24   : > { %300 = vmax.xlane.f32.xlu2 %v299_v26  ;;  %297 = vmax.xlane.f32.xlu1 %v296_v27  ;;  %v344_v26 = vsel %vm274_vm1, %v1419_v17, -inf  ;;  %v341_v27 = vsel %vm274_vm1, %v1424_v18, -inf }
  0x25   : > { %294 = vmax.xlane.f32.xlu0 %v293_v28  ;;  %v338_v28 = vsel %vm274_vm1, %v1429_v19, -inf }
  0x2c   : > { %309 = vmax.xlane.f32.xlu2 %v308_v35  ;;  %306 = vmax.xlane.f32.xlu1 %v305_v36  ;;  %v1438_v35 = vld [vmem:[%s1195_s16 + $0xd0] sm:$0xff]  ;;  %v1441_v36 = vld [vmem:[%s1195_s16 + $0xc8] sm:$0xff] }
  0x2d   : > { %303 = vmax.xlane.f32.xlu0 %v302_v37  ;;  %2040 = vst [vmem:[#allocation5_spill] sm:$0xff] %v1438_v35  ;;  %v1444_v37 = vld [vmem:[%s1195_s16 + $0xc0] sm:$0xff] }
  0x2e   : > { %2041 = vst [vmem:[#allocation6_spill] sm:$0xff] %v1441_v36 }
  0x2f   : > { %2042 = vst [vmem:[#allocation7_spill] sm:$0xff] %v1444_v37 }
  0x34   : > { %318 = vmax.xlane.f32.xlu2 %v317_v44  ;;  %315 = vmax.xlane.f32.xlu1 %v314_v45  ;;  %v1449_v44 = vsel %vm241_vm0, %v1438_v35, -inf  ;;  %v1454_v45 = vsel %vm241_vm0, %v1441_v36, -inf }
  0x35   : > { %312 = vmax.xlane.f32.xlu0 %v311_v46  ;;  %v1459_v46 = vsel %vm241_vm0, %v1444_v37, -inf }
  0x3c   : > { %327 = vmax.xlane.f32.xlu2 %v326_v53  ;;  %324 = vmax.xlane.f32.xlu1 %v323_v54  ;;  %v353_v53 = vsel %vm274_vm1, %v1449_v44, -inf  ;;  %v350_v54 = vsel %vm274_vm1, %v1454_v45, -inf }
  0x3d   : > { %321 = vmax.xlane.f32.xlu0 %v320_v55  ;;  %v347_v55 = vsel %vm274_vm1, %v1459_v46, -inf }
  0x44   : > { %336 = vmax.xlane.f32.xlu2 %v335_v62  ;;  %333 = vmax.xlane.f32.xlu1 %v332_v63  ;;  %v1468_v62 = vld [vmem:[%s1195_s16 + $0xe8] sm:$0xff]  ;;  %v1471_v63 = vld [vmem:[%s1195_s16 + $0xe0] sm:$0xff] }
  0x45   : > { %330 = vmax.xlane.f32.xlu0 %v329_v0  ;;  %2043 = vst [vmem:[#allocation8_spill] sm:$0xff] %v1468_v62  ;;  %v1474_v0 = vld [vmem:[%s1195_s16 + $0xd8] sm:$0xff] }
  0x46   : > { %2044 = vst [vmem:[#allocation9_spill] sm:$0xff] %v1471_v63 }
  0x47   : > { %2045 = vst [vmem:[#allocation10_spill] sm:$0xff] %v1474_v0 }
  0x4c   : > { %345 = vmax.xlane.f32.xlu2 %v344_v26  ;;  %342 = vmax.xlane.f32.xlu1 %v341_v27  ;;  %v1479_v26 = vsel %vm241_vm0, %v1468_v62, -inf  ;;  %v1484_v27 = vsel %vm241_vm0, %v1471_v63, -inf  ;;  %v1498_v62 = vld [vmem:[%s1195_s16 + $0xf8] sm:$0xff]  ;;  %v1501_v63 = vld [vmem:[%s1195_s16 + $0xf0] sm:$0xff] }
  0x4d   : > { %339 = vmax.xlane.f32.xlu0 %v338_v28  ;;  %v1489_v28 = vsel %vm241_vm0, %v1474_v0, -inf  ;;  %2046 = vst [vmem:[#allocation11_spill] sm:$0xff] %v1498_v62  ;;  %v1506_v35 = vsel %vm241_vm0, %v1498_v62, -inf  ;;  %v1511_v36 = vsel %vm241_vm0, %v1501_v63, -inf }
  0x4e   : > { %2047 = vst [vmem:[#allocation12_spill] sm:$0xff] %v1501_v63  ;;  %v368_v8 = vsel %vm274_vm1, %v1506_v35, -inf }
  0x54   : > { %354 = vmax.xlane.f32.xlu2 %v353_v53  ;;  %351 = vmax.xlane.f32.xlu1 %v350_v54  ;;  %v362_v53 = vsel %vm274_vm1, %v1479_v26, -inf  ;;  %v359_v54 = vsel %vm274_vm1, %v1484_v27, -inf }
  0x55   : > { %348 = vmax.xlane.f32.xlu0 %v347_v55  ;;  %v356_v55 = vsel %vm274_vm1, %v1489_v28, -inf }
  0x5c   : > { %363 = vmax.xlane.f32.xlu2 %v362_v53  ;;  %360 = vmax.xlane.f32.xlu1 %v359_v54  ;;  %v365_v53 = vsel %vm274_vm1, %v1511_v36, -inf  ;;  %v939_v54 = vadd.s32 4294967291, %v1186_v1 }
  0x5d   : > { %357 = vmax.xlane.f32.xlu0 %v356_v55 }
  0x5e   : > { %v1518_v55 = vcvt.s32.f32 %v939_v54 }
  0x64   : > { %369 = vmax.xlane.f32.xlu1 %v368_v8 }
  0x65   : > { %366 = vmax.xlane.f32.xlu0 %v365_v53 }
  0x87   : > { %v1520_v0 = vpop.xlane.xlu2 %288  ;;  %v1522_v62 = vpop.xlane.xlu1 %282 }
  0x88   : > { %vm373_vm2 = vcmp.eq.f32.partialorder %v1214_v6, %v1522_v62  ;;  %v1526_v63 = vpop.xlane.xlu0 %276  ;;  %vm375_vm7 = vcmp.eq.f32.partialorder %v1209_v5, %v1520_v0 }
  0x89   : > { %vm371_vm3 = vcmp.eq.f32.partialorder %v1219_v7, %v1526_v63  ;;  %v407_v9 = vsel %vm373_vm2, %v1518_v55, 16.0 }
  0x8a   : > { %v443_v8 = vsel %vm274_vm1, %v407_v9, inf  ;;  %v405_v53 = vsel %vm371_vm3, %v1518_v55, 16.0 }
  0x8b   : > { %444 = vmin.xlane.f32.xlu1 %v443_v8  ;;  %v437_v54 = vsel %vm274_vm1, %v405_v53, inf }
  0x8c   : > { %438 = vmin.xlane.f32.xlu2 %v437_v54 }
  0x8f   : > { %v1534_v56 = vpop.xlane.xlu2 %291  ;;  %v1536_v37 = vpop.xlane.xlu1 %285 }
  0x90   : > { %vm376_vm4 = vcmp.eq.f32.partialorder %v1239_v14, %v1534_v56  ;;  %vm374_vm5 = vcmp.eq.f32.partialorder %v1244_v15, %v1536_v37  ;;  %v1542_v6 = vpop.xlane.xlu0 %279 }
  0x91   : > { %vm372_vm6 = vcmp.eq.f32.partialorder %v1249_v16, %v1542_v6  ;;  %v410_v7 = vsel %vm376_vm4, %v1518_v55, 16.0  ;;  %v408_v9 = vsel %vm374_vm5, %v1518_v55, 16.0 }
  0x92   : > { %v452_v8 = vsel %vm274_vm1, %v410_v7, inf  ;;  %v446_v53 = vsel %vm274_vm1, %v408_v9, inf  ;;  %v406_v54 = vsel %vm372_vm6, %v1518_v55, 16.0  ;;  %v409_v9 = vsel %vm375_vm7, %v1518_v55, 16.0 }
  0x93   : > { %453 = vmin.xlane.f32.xlu1 %v452_v8  ;;  %v440_v14 = vsel %vm274_vm1, %v406_v54, inf  ;;  %v449_v54 = vsel %vm274_vm1, %v409_v9, inf }
  0x94   : > { %447 = vmin.xlane.f32.xlu2 %v446_v53  ;;  %441 = vmin.xlane.f32.xlu0 %v440_v14 }
  0x97   : > { %v1554_v15 = vpop.xlane.xlu2 %300  ;;  %v1556_v16 = vpop.xlane.xlu1 %297 }
  0x98   : > { %2048 = vst [vmem:[#allocation13_spill] sm:$0xff] %v1554_v15  ;;  %vm379_vm8 = vcmp.eq.f32.partialorder %v1269_v23, %v1554_v15  ;;  %v1560_v7 = vpop.xlane.xlu0 %294  ;;  %vm378_vm10 = vcmp.eq.f32.partialorder %v1274_v24, %v1556_v16 }
  0x99   : > { %vm377_vm9 = vcmp.eq.f32.partialorder %v1279_v25, %v1560_v7  ;;  %v413_v8 = vsel %vm379_vm8, %v1518_v55, 16.0  ;;  %v412_v23 = vsel %vm378_vm10, %v1518_v55, 16.0 }
  0x9a   : > { %v461_v53 = vsel %vm274_vm1, %v413_v8, inf  ;;  %v411_v5 = vsel %vm377_vm9, %v1518_v55, 16.0  ;;  %v458_v24 = vsel %vm274_vm1, %v412_v23, inf }
  0x9b   : > { %462 = vmin.xlane.f32.xlu1 %v461_v53  ;;  %v455_v14 = vsel %vm274_vm1, %v411_v5, inf }
  0x9c   : > { %450 = vmin.xlane.f32.xlu0 %v449_v54  ;;  %456 = vmin.xlane.f32.xlu2 %v455_v14 }
  0x9f   : > { %v1573_v15 = vpop.xlane.xlu2 %309  ;;  %v1575_v25 = vpop.xlane.xlu1 %306 }
  0xa0   : > { %vm382_vm11 = vcmp.eq.f32.partialorder %v1299_v32, %v1573_v15  ;;  %v1579_v8 = vpop.xlane.xlu0 %303  ;;  %vm381_vm13 = vcmp.eq.f32.partialorder %v1304_v33, %v1575_v25 }
  0xa1   : > { %vm380_vm12 = vcmp.eq.f32.partialorder %v1309_v34, %v1579_v8  ;;  %v416_v9 = vsel %vm382_vm11, %v1518_v55, 16.0  ;;  %v415_v32 = vsel %vm381_vm13, %v1518_v55, 16.0 }
  0xa2   : > { %v470_v53 = vsel %vm274_vm1, %v416_v9, inf  ;;  %v414_v5 = vsel %vm380_vm12, %v1518_v55, 16.0  ;;  %v467_v33 = vsel %vm274_vm1, %v415_v32, inf }
  0xa3   : > { %471 = vmin.xlane.f32.xlu1 %v470_v53  ;;  %v464_v54 = vsel %vm274_vm1, %v414_v5, inf }
  0xa4   : > { %459 = vmin.xlane.f32.xlu0 %v458_v24  ;;  %465 = vmin.xlane.f32.xlu2 %v464_v54 }
  0xa7   : > { %v1591_v14 = vpop.xlane.xlu2 %318  ;;  %v1593_v34 = vpop.xlane.xlu1 %315 }
  0xa8   : > { %vm385_vm14 = vcmp.eq.f32.partialorder %v1329_v41, %v1591_v14  ;;  %v1597_v23 = vpop.xlane.xlu0 %312  ;;  %vm384_vm0 = vcmp.eq.f32.partialorder %v1334_v42, %v1593_v34 }
  0xa9   : > { %vm383_vm15 = vcmp.eq.f32.partialorder %v1339_v43, %v1597_v23  ;;  %v419_v9 = vsel %vm385_vm14, %v1518_v55, 16.0  ;;  %v418_v41 = vsel %vm384_vm0, %v1518_v55, 16.0  ;;  %vm533_vm0 = vcmp.eq.s32.totalorder %v1186_v1, 4 }
  0xaa   : > { %v479_v24 = vsel %vm274_vm1, %v419_v9, inf  ;;  %v417_v53 = vsel %vm383_vm15, %v1518_v55, 16.0  ;;  %v476_v42 = vsel %vm274_vm1, %v418_v41, inf }
  0xab   : > { %480 = vmin.xlane.f32.xlu1 %v479_v24  ;;  %v473_v5 = vsel %vm274_vm1, %v417_v53, inf }
  0xac   : > { %468 = vmin.xlane.f32.xlu0 %v467_v33  ;;  %474 = vmin.xlane.f32.xlu2 %v473_v5 }
  0xaf   : > { %v1609_v54 = vpop.xlane.xlu2 %327  ;;  %v1611_v43 = vpop.xlane.xlu1 %324 }
  0xb0   : > { %vm388_vm2 = vcmp.eq.f32.partialorder %v1359_v50, %v1609_v54  ;;  %v1615_v32 = vpop.xlane.xlu0 %321  ;;  %vm387_vm4 = vcmp.eq.f32.partialorder %v1364_v51, %v1611_v43 }
  0xb1   : > { %vm386_vm3 = vcmp.eq.f32.partialorder %v1369_v52, %v1615_v32  ;;  %v422_v9 = vsel %vm388_vm2, %v1518_v55, 16.0  ;;  %v421_v50 = vsel %vm387_vm4, %v1518_v55, 16.0 }
  0xb2   : > { %v488_v33 = vsel %vm274_vm1, %v422_v9, inf  ;;  %v420_v24 = vsel %vm386_vm3, %v1518_v55, 16.0  ;;  %v485_v51 = vsel %vm274_vm1, %v421_v50, inf }
  0xb3   : > { %489 = vmin.xlane.f32.xlu1 %v488_v33  ;;  %v482_v53 = vsel %vm274_vm1, %v420_v24, inf }
  0xb4   : > { %477 = vmin.xlane.f32.xlu0 %v476_v42  ;;  %483 = vmin.xlane.f32.xlu2 %v482_v53 }
  0xb7   : > { %v1627_v5 = vpop.xlane.xlu2 %336  ;;  %v1629_v52 = vpop.xlane.xlu1 %333 }
  0xb8   : > { %vm391_vm5 = vcmp.eq.f32.partialorder %v1389_v59, %v1627_v5  ;;  %v1633_v41 = vpop.xlane.xlu0 %330  ;;  %vm390_vm7 = vcmp.eq.f32.partialorder %v1394_v60, %v1629_v52 }
  0xb9   : > { %vm389_vm6 = vcmp.eq.f32.partialorder %v1399_v61, %v1633_v41  ;;  %v425_v9 = vsel %vm391_vm5, %v1518_v55, 16.0  ;;  %v424_v59 = vsel %vm390_vm7, %v1518_v55, 16.0  ;;  %vm694_vm7 = vcmask 7168  }
  0xba   : > { %v497_v42 = vsel %vm274_vm1, %v425_v9, inf  ;;  %v423_v33 = vsel %vm389_vm6, %v1518_v55, 16.0  ;;  %v494_v60 = vsel %vm274_vm1, %v424_v59, inf }
  0xbb   : > { %498 = vmin.xlane.f32.xlu1 %v497_v42  ;;  %v491_v24 = vsel %vm274_vm1, %v423_v33, inf }
  0xbc   : > { %486 = vmin.xlane.f32.xlu0 %v485_v51  ;;  %492 = vmin.xlane.f32.xlu2 %v491_v24 }
  0xbf   : > { %v1645_v53 = vpop.xlane.xlu2 %345  ;;  %v1647_v61 = vpop.xlane.xlu1 %342 }
  0xc0   : > { %vm394_vm8 = vcmp.eq.f32.partialorder %v1419_v17, %v1645_v53  ;;  %v1651_v50 = vpop.xlane.xlu0 %339  ;;  %vm393_vm10 = vcmp.eq.f32.partialorder %v1424_v18, %v1647_v61 }
  0xc1   : > { %vm392_vm9 = vcmp.eq.f32.partialorder %v1429_v19, %v1651_v50  ;;  %v428_v9 = vsel %vm394_vm8, %v1518_v55, 16.0  ;;  %v427_v17 = vsel %vm393_vm10, %v1518_v55, 16.0 }
  0xc2   : > { %v506_v51 = vsel %vm274_vm1, %v428_v9, inf  ;;  %v426_v42 = vsel %vm392_vm9, %v1518_v55, 16.0  ;;  %v503_v18 = vsel %vm274_vm1, %v427_v17, inf }
  0xc3   : > { %507 = vmin.xlane.f32.xlu1 %v506_v51  ;;  %v500_v33 = vsel %vm274_vm1, %v426_v42, inf }
  0xc4   : > { %495 = vmin.xlane.f32.xlu0 %v494_v60  ;;  %501 = vmin.xlane.f32.xlu2 %v500_v33 }
  0xc7   : > { %v1663_v24 = vpop.xlane.xlu2 %354  ;;  %v1665_v19 = vpop.xlane.xlu1 %351 }
  0xc8   : > { %vm397_vm11 = vcmp.eq.f32.partialorder %v1449_v44, %v1663_v24  ;;  %v1669_v59 = vpop.xlane.xlu0 %348  ;;  %vm396_vm13 = vcmp.eq.f32.partialorder %v1454_v45, %v1665_v19 }
  0xc9   : > { %vm395_vm12 = vcmp.eq.f32.partialorder %v1459_v46, %v1669_v59  ;;  %v431_v9 = vsel %vm397_vm11, %v1518_v55, 16.0  ;;  %v430_v44 = vsel %vm396_vm13, %v1518_v55, 16.0 }
  0xca   : > { %v515_v60 = vsel %vm274_vm1, %v431_v9, inf  ;;  %v429_v51 = vsel %vm395_vm12, %v1518_v55, 16.0  ;;  %v512_v45 = vsel %vm274_vm1, %v430_v44, inf }
  0xcb   : > { %516 = vmin.xlane.f32.xlu1 %v515_v60  ;;  %v509_v42 = vsel %vm274_vm1, %v429_v51, inf }
  0xcc   : > { %504 = vmin.xlane.f32.xlu0 %v503_v18  ;;  %510 = vmin.xlane.f32.xlu2 %v509_v42 }
  0xcf   : > { %v1681_v33 = vpop.xlane.xlu2 %363  ;;  %v1683_v46 = vpop.xlane.xlu1 %360 }
  0xd0   : > { %vm400_vm14 = vcmp.eq.f32.partialorder %v1479_v26, %v1681_v33  ;;  %v1687_v17 = vpop.xlane.xlu0 %357  ;;  %vm399_vm2 = vcmp.eq.f32.partialorder %v1484_v27, %v1683_v46  ;;  %v534_v26 = vsel %vm533_vm0, %v1204_v4, -inf  ;;  %v537_v4 = vsel %vm533_vm0, %v1231_v12, -inf }
  0xd1   : > { %vm398_vm15 = vcmp.eq.f32.partialorder %v1489_v28, %v1687_v17  ;;  %v434_v9 = vsel %vm400_vm14, %v1518_v55, 16.0  ;;  %v433_v28 = vsel %vm399_vm2, %v1518_v55, 16.0  ;;  %v566_v44 = vsel %vm274_vm1, %v534_v26, -inf }
  0xd2   : > { %v524_v18 = vsel %vm274_vm1, %v434_v9, inf  ;;  %v432_v60 = vsel %vm398_vm15, %v1518_v55, 16.0  ;;  %v536_v12 = vsel %vm533_vm0, %v1201_v3, -inf  ;;  %v539_v3 = vsel %vm533_vm0, %v1228_v11, -inf }
  0xd3   : > { %525 = vmin.xlane.f32.xlu1 %v524_v18  ;;  %v518_v51 = vsel %vm274_vm1, %v432_v60, inf  ;;  %v521_v18 = vsel %vm274_vm1, %v433_v28, inf  ;;  %v542_v11 = vsel %vm533_vm0, %v1258_v20, -inf  ;;  %v545_v20 = vsel %vm533_vm0, %v1288_v29, -inf }
  0xd4   : > { %513 = vmin.xlane.f32.xlu0 %v512_v45  ;;  %519 = vmin.xlane.f32.xlu2 %v518_v51  ;;  %v575_v51 = vsel %vm274_vm1, %v537_v4, -inf }
  0xd7   : > { %v1706_v9 = vpop.xlane.xlu1 %369 }
  0xd8   : > { %v1703_v42 = vpop.xlane.xlu0 %366  ;;  %vm402_vm4 = vcmp.eq.f32.partialorder %v1506_v35, %v1706_v9  ;;  %v540_v35 = vsel %vm533_vm0, %v1264_v22, -inf  ;;  %v543_v22 = vsel %vm533_vm0, %v1294_v31, -inf  ;;  %v546_v31 = vsel %vm533_vm0, %v1324_v40, -inf }
  0xd9   : > { %vm401_vm3 = vcmp.eq.f32.partialorder %v1511_v36, %v1703_v42  ;;  %v436_v60 = vsel %vm402_vm4, %v1518_v55, 16.0  ;;  %v535_v36 = vsel %vm533_vm0, %v1234_v13, -inf  ;;  %v538_v13 = vsel %vm533_vm0, %v1198_v2, -inf }
  0xda   : > { %v435_v27 = vsel %vm401_vm3, %v1518_v55, 16.0  ;;  %v530_v26 = vsel %vm274_vm1, %v436_v60, inf  ;;  %v569_v28 = vsel %vm274_vm1, %v535_v36, -inf  ;;  %v584_v55 = vsel %vm274_vm1, %v540_v35, -inf }
  0xdb   : > { %567 = vmax.xlane.f32.xlu1 %v566_v44  ;;  %v527_v45 = vsel %vm274_vm1, %v435_v27, inf  ;;  %v572_v44 = vsel %vm274_vm1, %v536_v12, -inf  ;;  %v541_v2 = vsel %vm533_vm0, %v1261_v21, -inf  ;;  %v593_v27 = vsel %vm274_vm1, %v543_v22, -inf }
  0xdc   : > { %522 = vmin.xlane.f32.xlu0 %v521_v18  ;;  %528 = vmin.xlane.f32.xlu2 %v527_v45  ;;  %v578_v18 = vsel %vm274_vm1, %v538_v13, -inf  ;;  %v581_v45 = vsel %vm274_vm1, %v539_v3, -inf  ;;  %v587_v4 = vsel %vm274_vm1, %v541_v2, -inf  ;;  %v544_v21 = vsel %vm533_vm0, %v1291_v30, -inf }
  0xdd   : > { %v602_v60 = vsel %vm274_vm1, %v546_v31, -inf  ;;  %v590_v36 = vsel %vm274_vm1, %v542_v11, -inf  ;;  %v549_v40 = vsel %vm533_vm0, %v1354_v49, -inf  ;;  %v547_v30 = vsel %vm533_vm0, %v1321_v39, -inf }
  0xde   : > { %v599_v39 = vsel %vm274_vm1, %v545_v20, -inf  ;;  %v605_v49 = vsel %vm274_vm1, %v547_v30, -inf  ;;  %v552_v2 = vsel %vm533_vm0, %v1384_v58, -inf  ;;  %v550_v31 = vsel %vm533_vm0, %v1351_v48, -inf }
  0xdf   : > { %v614_v30 = vsel %vm274_vm1, %v550_v31, -inf }
  0xe3   : > { %576 = vmax.xlane.f32.xlu1 %v575_v51  ;;  %v596_v51 = vsel %vm274_vm1, %v544_v21, -inf }
  0xe4   : > { %531 = vmin.xlane.f32.xlu0 %v530_v26  ;;  %570 = vmax.xlane.f32.xlu2 %v569_v28 }
  0xeb   : > { %585 = vmax.xlane.f32.xlu1 %v584_v55 }
  0xec   : > { %573 = vmax.xlane.f32.xlu0 %v572_v44  ;;  %579 = vmax.xlane.f32.xlu2 %v578_v18  ;;  %v611_v44 = vsel %vm274_vm1, %v549_v40, -inf }
  0xf3   : > { %594 = vmax.xlane.f32.xlu1 %v593_v27  ;;  %v548_v27 = vsel %vm533_vm0, %v1318_v38, -inf }
  0xf4   : > { %582 = vmax.xlane.f32.xlu0 %v581_v45  ;;  %588 = vmax.xlane.f32.xlu2 %v587_v4  ;;  %v620_v4 = vsel %vm274_vm1, %v552_v2, -inf }
  0xfb   : > { %603 = vmax.xlane.f32.xlu1 %v602_v60 }
  0xfc   : > { %591 = vmax.xlane.f32.xlu0 %v590_v36  ;;  %597 = vmax.xlane.f32.xlu2 %v596_v51  ;;  %v608_v36 = vsel %vm274_vm1, %v548_v27, -inf }
  0xfe   : > { %v445_v26 = vpop.xlane.xlu1 %444 }
  0xff   : > { %vm955_vm5 = vcmp.lt.s32.totalorder %v445_v26, 0  ;;  %v956_v28 = vceil.f32 %v445_v26  ;;  %v957_v35 = vfloor.f32 %v445_v26  ;;  %v439_v12 = vpop.xlane.xlu2 %438 }
 0x100   : > { %vm945_vm6 = vcmp.lt.s32.totalorder %v439_v12, 0  ;;  %v946_v13 = vceil.f32 %v439_v12  ;;  %v947_v55 = vfloor.f32 %v439_v12 }
 0x101   : > { %v958_v29 = vsel %vm955_vm5, %v956_v28, %v957_v35 }
 0x102   : > { %v959_v18 = vcvt.f32.s32 %v958_v29  ;;  %v948_v22 = vsel %vm945_vm6, %v946_v13, %v947_v55  ;;  %v555_v13 = vsel %vm533_vm0, %v1414_v10, -inf  ;;  %v553_v10 = vsel %vm533_vm0, %v1381_v57, -inf }
 0x103   : > { %v949_v3 = vcvt.f32.s32 %v948_v22  ;;  %612 = vmax.xlane.f32.xlu1 %v611_v44  ;;  %v551_v44 = vsel %vm533_vm0, %v1348_v47, -inf }
 0x104   : > { %761 = vst.msk [vmem:[%s1775_s19 + $0x10] sm:$0xff] %vm694_vm7, %v959_v18  ;;  %600 = vmax.xlane.f32.xlu0 %v599_v39  ;;  %606 = vmax.xlane.f32.xlu2 %v605_v49  ;;  %v629_v39 = vsel %vm274_vm1, %v555_v13, -inf  ;;  %v617_v2 = vsel %vm274_vm1, %v551_v44, -inf }
 0x105   : > { %759 = vst.msk [vmem:[%s1775_s19] sm:$0xff] %vm694_vm7, %v949_v3 }
 0x106   : > { %v454_v45 = vpop.xlane.xlu1 %453 }
 0x107   : > { %vm970_vm8 = vcmp.lt.s32.totalorder %v454_v45, 0  ;;  %v971_v11 = vceil.f32 %v454_v45  ;;  %v972_v58 = vfloor.f32 %v454_v45  ;;  %v448_v21 = vpop.xlane.xlu2 %447  ;;  %v442_v60 = vpop.xlane.xlu0 %441 }
 0x108   : > { %vm960_vm9 = vcmp.lt.s32.totalorder %v448_v21, 0  ;;  %v961_v51 = vceil.f32 %v448_v21  ;;  %v962_v38 = vfloor.f32 %v448_v21  ;;  %vm950_vm10 = vcmp.lt.s32.totalorder %v442_v60, 0 }
 0x109   : > { %v973_v40 = vsel %vm970_vm8, %v971_v11, %v972_v58  ;;  %v951_v26 = vceil.f32 %v442_v60  ;;  %v952_v20 = vfloor.f32 %v442_v60  ;;  %v623_v11 = vsel %vm274_vm1, %v553_v10, -inf }
 0x10a   : > { %v974_v48 = vcvt.f32.s32 %v973_v40  ;;  %v963_v28 = vsel %vm960_vm9, %v961_v51, %v962_v38  ;;  %v2050_v40 = vld [vmem:[#allocation2_spill] sm:$0xff] }
 0x10b   : > { %v964_v35 = vcvt.f32.s32 %v963_v28  ;;  %v953_v12 = vsel %vm950_vm10, %v951_v26, %v952_v20  ;;  %621 = vmax.xlane.f32.xlu1 %v620_v4  ;;  %v554_v26 = vsel %vm533_vm0, %v2050_v40, -inf }
 0x10c   : > { %764 = vst.msk [vmem:[%s1775_s19 + $0x28] sm:$0xff] %vm694_vm7, %v974_v48  ;;  %v954_v55 = vcvt.f32.s32 %v953_v12  ;;  %609 = vmax.xlane.f32.xlu0 %v608_v36  ;;  %615 = vmax.xlane.f32.xlu2 %v614_v30  ;;  %v2049_v36 = vld [vmem:[#allocation7_spill] sm:$0xff]  ;;  %v2051_v48 = vld [vmem:[#allocation4_spill] sm:$0xff]  ;;  %v626_v44 = vsel %vm274_vm1, %v554_v26, -inf }
 0x10d   : > { %762 = vst.msk [vmem:[%s1775_s19 + $0x18] sm:$0xff] %vm694_vm7, %v964_v35  ;;  %v558_v51 = vsel %vm533_vm0, %v2049_v36, -inf  ;;  %v556_v28 = vsel %vm533_vm0, %v2051_v48, -inf }
 0x10e   : > { %760 = vst.msk [vmem:[%s1775_s19 + $0x8] sm:$0xff] %vm694_vm7, %v954_v55  ;;  %v463_v29 = vpop.xlane.xlu1 %462  ;;  %v638_v30 = vsel %vm274_vm1, %v558_v51, -inf }
 0x10f   : > { %vm985_vm11 = vcmp.lt.s32.totalorder %v463_v29, 0  ;;  %v986_v49 = vceil.f32 %v463_v29  ;;  %v987_v18 = vfloor.f32 %v463_v29  ;;  %v457_v22 = vpop.xlane.xlu2 %456  ;;  %v451_v3 = vpop.xlane.xlu0 %450 }
 0x110   : > { %vm975_vm12 = vcmp.lt.s32.totalorder %v457_v22, 0  ;;  %v976_v47 = vceil.f32 %v457_v22  ;;  %v977_v27 = vfloor.f32 %v457_v22  ;;  %vm965_vm13 = vcmp.lt.s32.totalorder %v451_v3, 0 }
 0x111   : > { %v988_v45 = vsel %vm985_vm11, %v986_v49, %v987_v18  ;;  %v966_v4 = vceil.f32 %v451_v3  ;;  %v967_v31 = vfloor.f32 %v451_v3  ;;  %v632_v22 = vsel %vm274_vm1, %v556_v28, -inf }
 0x112   : > { %v989_v57 = vcvt.f32.s32 %v988_v45  ;;  %v978_v58 = vsel %vm975_vm12, %v976_v47, %v977_v27  ;;  %v2052_v45 = vld [vmem:[#allocation10_spill] sm:$0xff] }
 0x113   : > { %v979_v21 = vcvt.f32.s32 %v978_v58  ;;  %v968_v60 = vsel %vm965_vm13, %v966_v4, %v967_v31  ;;  %630 = vmax.xlane.f32.xlu1 %v629_v39  ;;  %v561_v4 = vsel %vm533_vm0, %v2052_v45, -inf }
 0x114   : > { %767 = vst.msk [vmem:[%s1775_s19 + $0x40] sm:$0xff] %vm694_vm7, %v989_v57  ;;  %v969_v38 = vcvt.f32.s32 %v968_v60  ;;  %618 = vmax.xlane.f32.xlu0 %v617_v2  ;;  %624 = vmax.xlane.f32.xlu2 %v623_v11  ;;  %v2053_v11 = vld [vmem:[#allocation3_spill] sm:$0xff]  ;;  %v2054_v60 = vld [vmem:[#allocation6_spill] sm:$0xff] }
 0x115   : > { %765 = vst.msk [vmem:[%s1775_s19 + $0x30] sm:$0xff] %vm694_vm7, %v979_v21  ;;  %v557_v57 = vsel %vm533_vm0, %v2053_v11, -inf  ;;  %v647_v21 = vsel %vm274_vm1, %v561_v4, -inf  ;;  %v559_v36 = vsel %vm533_vm0, %v2054_v60, -inf }
 0x116   : > { %763 = vst.msk [vmem:[%s1775_s19 + $0x20] sm:$0xff] %vm694_vm7, %v969_v38  ;;  %v472_v20 = vpop.xlane.xlu1 %471 }
 0x117   : > { %vm1000_vm14 = vcmp.lt.s32.totalorder %v472_v20, 0  ;;  %v1001_v35 = vceil.f32 %v472_v20  ;;  %v1002_v12 = vfloor.f32 %v472_v20  ;;  %v466_v13 = vpop.xlane.xlu2 %465  ;;  %v460_v55 = vpop.xlane.xlu0 %459  ;;  %v635_v20 = vsel %vm274_vm1, %v557_v57, -inf }
 0x118   : > { %vm990_vm15 = vcmp.lt.s32.totalorder %v466_v13, 0  ;;  %v991_v29 = vceil.f32 %v466_v13  ;;  %v992_v39 = vfloor.f32 %v466_v13  ;;  %vm980_vm2 = vcmp.lt.s32.totalorder %v460_v55, 0 }
 0x119   : > { %v1003_v10 = vsel %vm1000_vm14, %v1001_v35, %v1002_v12  ;;  %v981_v49 = vceil.f32 %v460_v55  ;;  %v982_v18 = vfloor.f32 %v460_v55  ;;  %v641_v13 = vsel %vm274_vm1, %v559_v36, -inf }
 0x11a   : > { %v1004_v3 = vcvt.f32.s32 %v1003_v10  ;;  %v993_v2 = vsel %vm990_vm15, %v991_v29, %v992_v39  ;;  %v2055_v10 = vld [vmem:[#allocation12_spill] sm:$0xff] }
 0x11b   : > { %v994_v47 = vcvt.f32.s32 %v993_v2  ;;  %v983_v27 = vsel %vm980_vm2, %v981_v49, %v982_v18  ;;  %639 = vmax.xlane.f32.xlu1 %v638_v30  ;;  %v564_v49 = vsel %vm533_vm0, %v2055_v10, -inf }
 0x11c   : > { %770 = vst.msk [vmem:[%s1775_s19 + $0x58] sm:$0xff] %vm694_vm7, %v1004_v3  ;;  %v984_v31 = vcvt.f32.s32 %v983_v27  ;;  %627 = vmax.xlane.f32.xlu0 %v626_v44  ;;  %633 = vmax.xlane.f32.xlu2 %v632_v22  ;;  %v2056_v22 = vld [vmem:[#allocation5_spill] sm:$0xff] }
 0x11d   : > { %768 = vst.msk [vmem:[%s1775_s19 + $0x48] sm:$0xff] %vm694_vm7, %v994_v47  ;;  %v560_v3 = vsel %vm533_vm0, %v2056_v22, -inf  ;;  %v656_v47 = vsel %vm274_vm1, %v564_v49, -inf  ;;  %v2057_v27 = vld [vmem:[#allocation9_spill] sm:$0xff] }
 0x11e   : > { %766 = vst.msk [vmem:[%s1775_s19 + $0x38] sm:$0xff] %vm694_vm7, %v984_v31  ;;  %v481_v58 = vpop.xlane.xlu1 %480  ;;  %v562_v45 = vsel %vm533_vm0, %v2057_v27, -inf }
 0x11f   : > { %vm1015_vm3 = vcmp.lt.s32.totalorder %v481_v58, 0  ;;  %v1016_v51 = vceil.f32 %v481_v58  ;;  %v1017_v38 = vfloor.f32 %v481_v58  ;;  %v475_v40 = vpop.xlane.xlu2 %474  ;;  %v469_v26 = vpop.xlane.xlu0 %468  ;;  %v644_v58 = vsel %vm274_vm1, %v560_v3, -inf }
 0x120   : > { %vm1005_vm4 = vcmp.lt.s32.totalorder %v475_v40, 0  ;;  %v1006_v30 = vceil.f32 %v475_v40  ;;  %v1007_v48 = vfloor.f32 %v475_v40  ;;  %vm995_vm5 = vcmp.lt.s32.totalorder %v469_v26, 0 }
 0x121   : > { %v1018_v28 = vsel %vm1015_vm3, %v1016_v51, %v1017_v38  ;;  %v996_v35 = vceil.f32 %v469_v26  ;;  %v997_v12 = vfloor.f32 %v469_v26  ;;  %v650_v40 = vsel %vm274_vm1, %v562_v45, -inf }
 0x122   : > { %v1019_v55 = vcvt.f32.s32 %v1018_v28  ;;  %v1008_v44 = vsel %vm1005_vm4, %v1006_v30, %v1007_v48 }
 0x123   : > { %v1009_v29 = vcvt.f32.s32 %v1008_v44  ;;  %v998_v39 = vsel %vm995_vm5, %v996_v35, %v997_v12  ;;  %648 = vmax.xlane.f32.xlu1 %v647_v21  ;;  %v2058_v35 = vld [vmem:[#allocation8_spill] sm:$0xff] }
 0x124   : > { %773 = vst.msk [vmem:[%s1775_s19 + $0x70] sm:$0xff] %vm694_vm7, %v1019_v55  ;;  %v999_v18 = vcvt.f32.s32 %v998_v39  ;;  %636 = vmax.xlane.f32.xlu0 %v635_v20  ;;  %642 = vmax.xlane.f32.xlu2 %v641_v13  ;;  %v563_v12 = vsel %vm533_vm0, %v2058_v35, -inf  ;;  %v2059_v55 = vld [vmem:[#allocation11_spill] sm:$0xff] }
 0x125   : > { %771 = vst.msk [vmem:[%s1775_s19 + $0x60] sm:$0xff] %vm694_vm7, %v1009_v29  ;;  %v565_v44 = vsel %vm533_vm0, %v2059_v55, -inf }
 0x126   : > { %769 = vst.msk [vmem:[%s1775_s19 + $0x50] sm:$0xff] %vm694_vm7, %v999_v18  ;;  %v490_v2 = vpop.xlane.xlu1 %489  ;;  %v653_v18 = vsel %vm274_vm1, %v563_v12, -inf  ;;  %v659_v1 = vsel %vm274_vm1, %v565_v44, -inf }
 0x127   : > { %vm1030_vm6 = vcmp.lt.s32.totalorder %v490_v2, 0  ;;  %v1031_v4 = vceil.f32 %v490_v2  ;;  %v1032_v31 = vfloor.f32 %v490_v2  ;;  %v484_v11 = vpop.xlane.xlu2 %483  ;;  %v478_v57 = vpop.xlane.xlu0 %477 }
 0x128   : > { %vm1020_vm8 = vcmp.lt.s32.totalorder %v484_v11, 0  ;;  %v1021_v21 = vceil.f32 %v484_v11  ;;  %v1022_v60 = vfloor.f32 %v484_v11  ;;  %vm1010_vm9 = vcmp.lt.s32.totalorder %v478_v57, 0 }
 0x129   : > { %v1033_v36 = vsel %vm1030_vm6, %v1031_v4, %v1032_v31  ;;  %v1011_v51 = vceil.f32 %v478_v57  ;;  %v1012_v38 = vfloor.f32 %v478_v57 }
 0x12a   : > { %v1034_v26 = vcvt.f32.s32 %v1033_v36  ;;  %v1023_v20 = vsel %vm1020_vm8, %v1021_v21, %v1022_v60 }
 0x12b   : > { %v1024_v30 = vcvt.f32.s32 %v1023_v20  ;;  %v1013_v48 = vsel %vm1010_vm9, %v1011_v51, %v1012_v38  ;;  %657 = vmax.xlane.f32.xlu1 %v656_v47 }
 0x12c   : > { %776 = vst.msk [vmem:[%s1775_s19 + $0x88] sm:$0xff] %vm694_vm7, %v1034_v26  ;;  %v1014_v28 = vcvt.f32.s32 %v1013_v48  ;;  %645 = vmax.xlane.f32.xlu0 %v644_v58  ;;  %651 = vmax.xlane.f32.xlu2 %v650_v40 }
 0x12d   : > { %774 = vst.msk [vmem:[%s1775_s19 + $0x78] sm:$0xff] %vm694_vm7, %v1024_v30 }
 0x12e   : > { %772 = vst.msk [vmem:[%s1775_s19 + $0x68] sm:$0xff] %vm694_vm7, %v1014_v28  ;;  %v499_v13 = vpop.xlane.xlu1 %498 }
 0x12f   : > { %vm1045_vm10 = vcmp.lt.s32.totalorder %v499_v13, 0  ;;  %v1046_v29 = vceil.f32 %v499_v13  ;;  %v1047_v39 = vfloor.f32 %v499_v13  ;;  %v493_v10 = vpop.xlane.xlu2 %492  ;;  %v487_v49 = vpop.xlane.xlu0 %486 }
 0x130   : > { %vm1035_vm11 = vcmp.lt.s32.totalorder %v493_v10, 0  ;;  %v1036_v22 = vceil.f32 %v493_v10  ;;  %v1037_v3 = vfloor.f32 %v493_v10  ;;  %vm1025_vm12 = vcmp.lt.s32.totalorder %v487_v49, 0 }
 0x131   : > { %v1048_v2 = vsel %vm1045_vm10, %v1046_v29, %v1047_v39  ;;  %v1026_v47 = vceil.f32 %v487_v49  ;;  %v1027_v27 = vfloor.f32 %v487_v49 }
 0x132   : > { %v1049_v45 = vcvt.f32.s32 %v1048_v2  ;;  %v1038_v4 = vsel %vm1035_vm11, %v1036_v22, %v1037_v3 }
 0x133   : > { %v1039_v31 = vcvt.f32.s32 %v1038_v4  ;;  %v1028_v11 = vsel %vm1025_vm12, %v1026_v47, %v1027_v27 }
 0x134   : > { %779 = vst.msk [vmem:[%s1775_s19 + $0xa0] sm:$0xff] %vm694_vm7, %v1049_v45  ;;  %v1029_v57 = vcvt.f32.s32 %v1028_v11  ;;  %654 = vmax.xlane.f32.xlu0 %v653_v18  ;;  %660 = vmax.xlane.f32.xlu2 %v659_v1 }
 0x135   : > { %777 = vst.msk [vmem:[%s1775_s19 + $0x90] sm:$0xff] %vm694_vm7, %v1039_v31 }
 0x136   : > { %775 = vst.msk [vmem:[%s1775_s19 + $0x80] sm:$0xff] %vm694_vm7, %v1029_v57  ;;  %v508_v58 = vpop.xlane.xlu1 %507 }
 0x137   : > { %vm1060_vm0 = vcmp.lt.s32.totalorder %v508_v58, 0  ;;  %v1061_v21 = vceil.f32 %v508_v58  ;;  %v1062_v60 = vfloor.f32 %v508_v58  ;;  %v502_v36 = vpop.xlane.xlu2 %501  ;;  %v496_v51 = vpop.xlane.xlu0 %495 }
 0x138   : > { %vm1050_vm1 = vcmp.lt.s32.totalorder %v502_v36, 0  ;;  %v1051_v38 = vceil.f32 %v502_v36  ;;  %v1052_v40 = vfloor.f32 %v502_v36  ;;  %vm1040_vm13 = vcmp.lt.s32.totalorder %v496_v51, 0 }
 0x139   : > { %v1063_v26 = vsel %vm1060_vm0, %v1061_v21, %v1062_v60  ;;  %v1041_v20 = vceil.f32 %v496_v51  ;;  %v1042_v30 = vfloor.f32 %v496_v51 }
 0x13a   : > { %v1064_v48 = vcvt.f32.s32 %v1063_v26  ;;  %v1053_v28 = vsel %vm1050_vm1, %v1051_v38, %v1052_v40 }
 0x13b   : > { %v1054_v35 = vcvt.f32.s32 %v1053_v28  ;;  %v1043_v12 = vsel %vm1040_vm13, %v1041_v20, %v1042_v30 }
 0x13c   : > { %782 = vst.msk [vmem:[%s1775_s19 + $0xb8] sm:$0xff] %vm694_vm7, %v1064_v48  ;;  %v1044_v13 = vcvt.f32.s32 %v1043_v12 }
 0x13d   : > { %780 = vst.msk [vmem:[%s1775_s19 + $0xa8] sm:$0xff] %vm694_vm7, %v1054_v35 }
 0x13e   : > { %778 = vst.msk [vmem:[%s1775_s19 + $0x98] sm:$0xff] %vm694_vm7, %v1044_v13  ;;  %v517_v55 = vpop.xlane.xlu1 %516 }
 0x13f   : > { %vm1075_vm14 = vcmp.lt.s32.totalorder %v517_v55, 0  ;;  %v1076_v44 = vceil.f32 %v517_v55  ;;  %v1077_v29 = vfloor.f32 %v517_v55  ;;  %v511_v39 = vpop.xlane.xlu2 %510  ;;  %v505_v10 = vpop.xlane.xlu0 %504 }
 0x140   : > { %vm1065_vm15 = vcmp.lt.s32.totalorder %v511_v39, 0  ;;  %v1066_v49 = vceil.f32 %v511_v39  ;;  %v1067_v18 = vfloor.f32 %v511_v39  ;;  %vm1055_vm2 = vcmp.lt.s32.totalorder %v505_v10, 0 }
 0x141   : > { %v1078_v22 = vsel %vm1075_vm14, %v1076_v44, %v1077_v29  ;;  %v1056_v3 = vceil.f32 %v505_v10  ;;  %v1057_v2 = vfloor.f32 %v505_v10 }
 0x142   : > { %v1079_v47 = vcvt.f32.s32 %v1078_v22  ;;  %v1068_v27 = vsel %vm1065_vm15, %v1066_v49, %v1067_v18 }
 0x143   : > { %v1069_v1 = vcvt.f32.s32 %v1068_v27  ;;  %v1058_v45 = vsel %vm1055_vm2, %v1056_v3, %v1057_v2 }
 0x144   : > { %785 = vst.msk [vmem:[%s1775_s19 + $0xd0] sm:$0xff] %vm694_vm7, %v1079_v47  ;;  %v1059_v4 = vcvt.f32.s32 %v1058_v45 }
 0x145   : > { %783 = vst.msk [vmem:[%s1775_s19 + $0xc0] sm:$0xff] %vm694_vm7, %v1069_v1 }
 0x146   : > { %781 = vst.msk [vmem:[%s1775_s19 + $0xb0] sm:$0xff] %vm694_vm7, %v1059_v4  ;;  %v526_v31 = vpop.xlane.xlu1 %525 }
 0x147   : > { %vm1090_vm3 = vcmp.lt.s32.totalorder %v526_v31, 0  ;;  %v1091_v11 = vceil.f32 %v526_v31  ;;  %v1092_v57 = vfloor.f32 %v526_v31  ;;  %v520_v58 = vpop.xlane.xlu2 %519  ;;  %v514_v21 = vpop.xlane.xlu0 %513 }
 0x148   : > { %vm1080_vm4 = vcmp.lt.s32.totalorder %v520_v58, 0  ;;  %v1081_v60 = vceil.f32 %v520_v58  ;;  %v1082_v36 = vfloor.f32 %v520_v58  ;;  %vm1070_vm5 = vcmp.lt.s32.totalorder %v514_v21, 0 }
 0x149   : > { %v1093_v51 = vsel %vm1090_vm3, %v1091_v11, %v1092_v57  ;;  %v1071_v38 = vceil.f32 %v514_v21  ;;  %v1072_v40 = vfloor.f32 %v514_v21 }
 0x14a   : > { %v1094_v26 = vcvt.f32.s32 %v1093_v51  ;;  %v1083_v20 = vsel %vm1080_vm4, %v1081_v60, %v1082_v36 }
 0x14b   : > { %v1084_v30 = vcvt.f32.s32 %v1083_v20  ;;  %v1073_v48 = vsel %vm1070_vm5, %v1071_v38, %v1072_v40 }
 0x14c   : > { %788 = vst.msk [vmem:[%s1775_s19 + $0xe8] sm:$0xff] %vm694_vm7, %v1094_v26  ;;  %v1074_v28 = vcvt.f32.s32 %v1073_v48  ;;  %v2060_v48 = vld [vmem:[#allocation13_spill] sm:$0xff] }
 0x14d   : > { %786 = vst.msk [vmem:[%s1775_s19 + $0xd8] sm:$0xff] %vm694_vm7, %v1084_v30 }
 0x14e   : > { %784 = vst.msk [vmem:[%s1775_s19 + $0xc8] sm:$0xff] %vm694_vm7, %v1074_v28  ;;  %v568_v35 = vpop.xlane.xlu1 %567 }
 0x14f   : > { %v662_v12 = vmul.f32 %v568_v35, %v1526_v63  ;;  %v529_v13 = vpop.xlane.xlu2 %528  ;;  %v523_v55 = vpop.xlane.xlu0 %522 }
 0x150   : > { %vm1095_vm6 = vcmp.lt.s32.totalorder %v529_v13, 0  ;;  %v1096_v44 = vceil.f32 %v529_v13  ;;  %v1097_v29 = vfloor.f32 %v529_v13  ;;  %vm1085_vm8 = vcmp.lt.s32.totalorder %v523_v55, 0 }
 0x151   : > { %695 = vst.msk [vmem:[%s1909_s22] sm:$0xff] %vm694_vm7, %v662_v12  ;;  %v1086_v39 = vceil.f32 %v523_v55  ;;  %v1087_v10 = vfloor.f32 %v523_v55 }
 0x152   : > { %v1098_v49 = vsel %vm1095_vm6, %v1096_v44, %v1097_v29 }
 0x153   : > { %v1099_v18 = vcvt.f32.s32 %v1098_v49  ;;  %v1088_v22 = vsel %vm1085_vm8, %v1086_v39, %v1087_v10 }
 0x154   : > { %v1089_v3 = vcvt.f32.s32 %v1088_v22 }
 0x155   : > { %789 = vst.msk [vmem:[%s1775_s19 + $0xf0] sm:$0xff] %vm694_vm7, %v1099_v18 }
 0x156   : > { %787 = vst.msk [vmem:[%s1775_s19 + $0xe0] sm:$0xff] %vm694_vm7, %v1089_v3  ;;  %v577_v63 = vpop.xlane.xlu1 %576 }
 0x157   : > { %v665_v2 = vmul.f32 %v577_v63, %v1536_v37  ;;  %v571_v47 = vpop.xlane.xlu2 %570  ;;  %v532_v27 = vpop.xlane.xlu0 %531 }
 0x158   : > { %v663_v1 = vmul.f32 %v571_v47, %v1542_v6  ;;  %vm1100_vm9 = vcmp.lt.s32.totalorder %v532_v27, 0  ;;  %v1101_v45 = vceil.f32 %v532_v27  ;;  %v1102_v4 = vfloor.f32 %v532_v27 }
 0x159   : > { %698 = vst.msk [vmem:[%s1909_s22 + $0x18] sm:$0xff] %vm694_vm7, %v665_v2 }
 0x15a   : > { %696 = vst.msk [vmem:[%s1909_s22 + $0x8] sm:$0xff] %vm694_vm7, %v663_v1  ;;  %v1103_v31 = vsel %vm1100_vm9, %v1101_v45, %v1102_v4 }
 0x15b   : > { %v1104_v11 = vcvt.f32.s32 %v1103_v31 }
 0x15d   : > { %790 = vst.msk [vmem:[%s1775_s19 + $0xf8] sm:$0xff] %vm694_vm7, %v1104_v11 }
 0x15e   : > { %v586_v37 = vpop.xlane.xlu1 %585 }
 0x15f   : > { %v668_v57 = vmul.f32 %v586_v37, %v1560_v7  ;;  %v580_v6 = vpop.xlane.xlu2 %579  ;;  %v574_v58 = vpop.xlane.xlu0 %573 }
 0x160   : > { %v666_v21 = vmul.f32 %v580_v6, %v1520_v0  ;;  %v664_v60 = vmul.f32 %v574_v58, %v1522_v62 }
 0x161   : > { %701 = vst.msk [vmem:[%s1909_s22 + $0x30] sm:$0xff] %vm694_vm7, %v668_v57 }
 0x162   : > { %699 = vst.msk [vmem:[%s1909_s22 + $0x20] sm:$0xff] %vm694_vm7, %v666_v21 }
 0x163   : > { %697 = vst.msk [vmem:[%s1909_s22 + $0x10] sm:$0xff] %vm694_vm7, %v664_v60 }
 0x166   : > { %v595_v36 = vpop.xlane.xlu1 %594 }
 0x167   : > { %v671_v51 = vmul.f32 %v595_v36, %v1579_v8  ;;  %v589_v7 = vpop.xlane.xlu2 %588  ;;  %v583_v38 = vpop.xlane.xlu0 %582 }
 0x168   : > { %v669_v40 = vmul.f32 %v589_v7, %v1556_v16  ;;  %v667_v0 = vmul.f32 %v583_v38, %v1534_v56 }
 0x169   : > { %704 = vst.msk [vmem:[%s1909_s22 + $0x48] sm:$0xff] %vm694_vm7, %v671_v51 }
 0x16a   : > { %702 = vst.msk [vmem:[%s1909_s22 + $0x38] sm:$0xff] %vm694_vm7, %v669_v40 }
 0x16b   : > { %700 = vst.msk [vmem:[%s1909_s22 + $0x28] sm:$0xff] %vm694_vm7, %v667_v0 }
 0x16e   : > { %v604_v62 = vpop.xlane.xlu1 %603 }
 0x16f   : > { %v674_v26 = vmul.f32 %v604_v62, %v1597_v23  ;;  %v598_v8 = vpop.xlane.xlu2 %597  ;;  %v592_v20 = vpop.xlane.xlu0 %591 }
 0x170   : > { %v672_v30 = vmul.f32 %v598_v8, %v1575_v25  ;;  %v670_v16 = vmul.f32 %v592_v20, %v2060_v48 }
 0x171   : > { %707 = vst.msk [vmem:[%s1909_s22 + $0x60] sm:$0xff] %vm694_vm7, %v674_v26 }
 0x172   : > { %705 = vst.msk [vmem:[%s1909_s22 + $0x50] sm:$0xff] %vm694_vm7, %v672_v30 }
 0x173   : > { %703 = vst.msk [vmem:[%s1909_s22 + $0x40] sm:$0xff] %vm694_vm7, %v670_v16 }
 0x176   : > { %v613_v56 = vpop.xlane.xlu1 %612 }
 0x177   : > { %v677_v28 = vmul.f32 %v613_v56, %v1615_v32  ;;  %v607_v23 = vpop.xlane.xlu2 %606  ;;  %v601_v35 = vpop.xlane.xlu0 %600 }
 0x178   : > { %v675_v12 = vmul.f32 %v607_v23, %v1593_v34  ;;  %v673_v25 = vmul.f32 %v601_v35, %v1573_v15 }
 0x179   : > { %710 = vst.msk [vmem:[%s1909_s22 + $0x78] sm:$0xff] %vm694_vm7, %v677_v28 }
 0x17a   : > { %708 = vst.msk [vmem:[%s1909_s22 + $0x68] sm:$0xff] %vm694_vm7, %v675_v12 }
 0x17b   : > { %706 = vst.msk [vmem:[%s1909_s22 + $0x58] sm:$0xff] %vm694_vm7, %v673_v25 }
 0x17e   : > { %v622_v13 = vpop.xlane.xlu1 %621 }
 0x17f   : > { %v680_v55 = vmul.f32 %v622_v13, %v1633_v41  ;;  %v616_v32 = vpop.xlane.xlu2 %615  ;;  %v610_v44 = vpop.xlane.xlu0 %609 }
 0x180   : > { %v678_v29 = vmul.f32 %v616_v32, %v1611_v43  ;;  %v676_v34 = vmul.f32 %v610_v44, %v1591_v14 }
 0x181   : > { %713 = vst.msk [vmem:[%s1909_s22 + $0x90] sm:$0xff] %vm694_vm7, %v680_v55 }
 0x182   : > { %711 = vst.msk [vmem:[%s1909_s22 + $0x80] sm:$0xff] %vm694_vm7, %v678_v29 }
 0x183   : > { %709 = vst.msk [vmem:[%s1909_s22 + $0x70] sm:$0xff] %vm694_vm7, %v676_v34 }
 0x186   : > { %v631_v15 = vpop.xlane.xlu1 %630 }
 0x187   : > { %v683_v39 = vmul.f32 %v631_v15, %v1651_v50  ;;  %v625_v41 = vpop.xlane.xlu2 %624  ;;  %v619_v10 = vpop.xlane.xlu0 %618 }
 0x188   : > { %v681_v49 = vmul.f32 %v625_v41, %v1629_v52  ;;  %v679_v43 = vmul.f32 %v619_v10, %v1609_v54 }
 0x189   : > { %716 = vst.msk [vmem:[%s1909_s22 + $0xa8] sm:$0xff] %vm694_vm7, %v683_v39 }
 0x18a   : > { %714 = vst.msk [vmem:[%s1909_s22 + $0x98] sm:$0xff] %vm694_vm7, %v681_v49 }
 0x18b   : > { %712 = vst.msk [vmem:[%s1909_s22 + $0x88] sm:$0xff] %vm694_vm7, %v679_v43 }
 0x18e   : > { %v640_v14 = vpop.xlane.xlu1 %639 }
 0x18f   : > { %v686_v18 = vmul.f32 %v640_v14, %v1669_v59  ;;  %v634_v50 = vpop.xlane.xlu2 %633  ;;  %v628_v22 = vpop.xlane.xlu0 %627 }
 0x190   : > { %v684_v3 = vmul.f32 %v634_v50, %v1647_v61  ;;  %v682_v52 = vmul.f32 %v628_v22, %v1627_v5 }
 0x191   : > { %719 = vst.msk [vmem:[%s1909_s22 + $0xc0] sm:$0xff] %vm694_vm7, %v686_v18 }
 0x192   : > { %717 = vst.msk [vmem:[%s1909_s22 + $0xb0] sm:$0xff] %vm694_vm7, %v684_v3 }
 0x193   : > { %715 = vst.msk [vmem:[%s1909_s22 + $0xa0] sm:$0xff] %vm694_vm7, %v682_v52 }
 0x196   : > { %v649_v54 = vpop.xlane.xlu1 %648 }
 0x197   : > { %v689_v63 = vmul.f32 %v649_v54, %v1687_v17  ;;  %v643_v59 = vpop.xlane.xlu2 %642  ;;  %v637_v2 = vpop.xlane.xlu0 %636 }
 0x198   : > { %v687_v47 = vmul.f32 %v643_v59, %v1665_v19  ;;  %v685_v61 = vmul.f32 %v637_v2, %v1645_v53 }
 0x199   : > { %722 = vst.msk [vmem:[%s1909_s22 + $0xd8] sm:$0xff] %vm694_vm7, %v689_v63 }
 0x19a   : > { %720 = vst.msk [vmem:[%s1909_s22 + $0xc8] sm:$0xff] %vm694_vm7, %v687_v47 }
 0x19b   : > { %718 = vst.msk [vmem:[%s1909_s22 + $0xb8] sm:$0xff] %vm694_vm7, %v685_v61 }
 0x19e   : > { %v658_v5 = vpop.xlane.xlu1 %657 }
 0x19f   : > { %v692_v27 = vmul.f32 %v658_v5, %v1703_v42  ;;  %v652_v1 = vpop.xlane.xlu2 %651  ;;  %v646_v17 = vpop.xlane.xlu0 %645 }
 0x1a0   : > { %v690_v45 = vmul.f32 %v652_v1, %v1683_v46  ;;  %v688_v4 = vmul.f32 %v646_v17, %v1663_v24 }
 0x1a1   : > { %725 = vst.msk [vmem:[%s1909_s22 + $0xf0] sm:$0xff] %vm694_vm7, %v692_v27 }
 0x1a2   : > { %723 = vst.msk [vmem:[%s1909_s22 + $0xe0] sm:$0xff] %vm694_vm7, %v690_v45 }
 0x1a3   : > { %721 = vst.msk [vmem:[%s1909_s22 + $0xd0] sm:$0xff] %vm694_vm7, %v688_v4 }
 0x1a7   : > { %v661_v53 = vpop.xlane.xlu2 %660  ;;  %v655_v19 = vpop.xlane.xlu0 %654 }
 0x1a8   : > { %v693_v31 = vmul.f32 %v661_v53, %v1706_v9  ;;  %v691_v11 = vmul.f32 %v655_v19, %v1681_v33 }
 0x1aa   : > { %726 = vst.msk [vmem:[%s1909_s22 + $0xf8] sm:$0xff] %vm694_vm7, %v693_v31 }
 0x1ab   : > { %724 = vst.msk [vmem:[%s1909_s22 + $0xe8] sm:$0xff] %vm694_vm7, %v691_v11 }
 0x1ac PF: > { %s13_s11 = sadd.s32 1, %s1151_s11   ;;  %s2061_s9 = smov %s1147_s10 }
 0x1ad   : > { %p10_p5 = scmp.ge.s32.totalorder %s13_s11, 4   ;;  %s2062_s10 = smov %s2064_s12 }
 0x1af   :  { %12 = sbr.rel (!%p10_p5) target bundleno = 2 (0x2), region = 66 }

</bundles_post_ra>
